<compile_context>
chip_gen: v7x
topology: tpu7x:2x2x1
jax: 0.10.0
libtpu: 0.0.40
codegen_flags: <defaults>
</compile_context>

<pallas_src>
import functools

import jax
import jax.numpy as jnp
import numpy as np
from jax.experimental import pallas as pl
from jax.experimental.pallas import tpu as pltpu

_EPS = 1e-6          # eps used by torch.nn.functional.pairwise_distance
_BIG = 1.0e6         # masked_fill sentinel used by the PyTorch module
_DEFAULT_VMEM_CAP = 64 * 1024 * 1024   # assume smallest generation (v7x) if unknown


def _round_up(x, m):
    return ((x + m - 1) // m) * m


def _vmem_budget_bytes():
    """Scoped-VMEM budget: ~3/4 of physical, capped at 96 MiB (v5e/v6e: 128 MiB
    physical -> 96 MiB budget; v7x: 64 MiB physical -> 48 MiB budget)."""
    cap = _DEFAULT_VMEM_CAP
    try:
        info = pltpu.get_tpu_info()
        cap = int(getattr(info, "vmem_capacity_bytes", cap))
    except Exception:
        pass
    return int(min(max(cap * 3 // 4, 16 * 1024 * 1024), 96 * 1024 * 1024))


def _batch_pad_and_row_tile(b):
    """Padded batch and default row tile (multiples of (8,128)-friendly sizes)."""
    if b <= 128:
        return 128, 128
    return _round_up(b, 256), 256


def _pick_col_tile(b_pad, tm, d_pad, itemsize, budget):
    """Largest column tile (multiple of 128 dividing b_pad) fitting the VMEM
    budget: tn == b_pad means y is fully VMEM-resident (fetched once)."""
    cands = sorted(
        {t for t in (b_pad, b_pad // 2, b_pad // 4, b_pad // 8,
                     4096, 2048, 1024, 512, 256, 128)
         if t >= 128 and t % 128 == 0 and b_pad % t == 0},
        reverse=True)
    fixed = 2 * tm * d_pad * itemsize + (4 << 20)   # double-buffered x tile + slack
    for tn in cands:
        cost = fixed + 2 * tn * d_pad * itemsize + 10 * tm * tn * 4
        if cost <= budget:
            return tn
    return 128


# ---------------------------------------------------------------------------
# Shared per-tile distance math: one MXU matmul, f32 accumulation.
#   L2 : d = sqrt(max(x_stat + y_stat - 2 x.y + D*eps^2, 0))
#   COS: d = x_stat + y_stat - x.y   (stats are 0 for real rows/cols)
# Sentinel stats for padded rows/cols push d to ~1e6 so padded hinge terms
# vanish without any per-element masking.
# ---------------------------------------------------------------------------
def _tile_distance(x, y, x_stat, y_stat, *, distance_type, d_eps_sq):
    xy = jax.lax.dot_general(x, y, (((1,), (1,)), ((), ())),
                             preferred_element_type=jnp.float32)      # [TM, TN]
    if distance_type == "L2":
        sq = (x_stat + y_stat - 2.0 * xy) + d_eps_sq
        return jnp.sqrt(jnp.maximum(sq, 0.0))
    return (x_stat + y_stat) - xy


# ---------------------------------------------------------------------------
# Kernel A (k == B): fused distance + hinge + partial-sum reduction.
# No iota / select epilogue at all; the diagonal is corrected in the wrapper.
# ---------------------------------------------------------------------------
def _fused_loss_kernel(x_ref, y_ref, xstat_ref, ystat_ref, posr_ref, posc_ref,
                       oxy_ref, oyx_ref, *, distance_type, margin, d_eps_sq):
    @pl.when(pl.program_id(1) == 0)
    def _():
        oxy_ref[...] = jnp.zeros_like(oxy_ref)
        oyx_ref[...] = jnp.zeros_like(oyx_ref)

    dist = _tile_distance(x_ref[...], y_ref[...], xstat_ref[...], ystat_ref[...],
                          distance_type=distance_type, d_eps_sq=d_eps_sq)

    hx = jnp.maximum((margin + posr_ref[...]) - dist, 0.0)   # loss_xy terms
    hy = jnp.maximum((margin + posc_ref[...]) - dist, 0.0)   # loss_yx terms

    # Sublane (axis-0) partials into the VMEM-resident output block; the final
    # cross-lane reduce is a tiny XLA sum over (n_row_tiles, 1, tn).
    oxy_ref[...] += jnp.sum(hx, axis=0, keepdims=True)[None]
    oyx_ref[...] += jnp.sum(hy, axis=0, keepdims=True)[None]


def _fused_loss_pallas(x_pad, y_pad, x_stat, y_stat, pos_row, pos_col, *,
                       distance_type, margin, d_eps_sq, tm, tn, vmem_limit):
    b_pad, d_pad = x_pad.shape
    ni, nj = b_pad // tm, b_pad // tn
    kernel = functools.partial(_fused_loss_kernel, distance_type=distance_type,
                               margin=float(margin), d_eps_sq=float(d_eps_sq))
    out_xy, out_yx = pl.pallas_call(
        kernel,
        out_shape=(jax.ShapeDtypeStruct((ni, 1, tn), jnp.float32),
                   jax.ShapeDtypeStruct((ni, 1, tn), jnp.float32)),
        grid=(ni, nj),
        in_specs=[pl.BlockSpec((tm, d_pad), lambda i, j: (i, 0)),   # x rows
                  pl.BlockSpec((tn, d_pad), lambda i, j: (j, 0)),   # y rows (resident if nj==1)
                  pl.BlockSpec((tm, 1), lambda i, j: (i, 0)),       # x L2 stat / pad sentinel
                  pl.BlockSpec((1, tn), lambda i, j: (0, j)),       # y L2 stat / pad sentinel
                  pl.BlockSpec((tm, 1), lambda i, j: (i, 0)),       # pos per row
                  pl.BlockSpec((1, tn), lambda i, j: (0, j))],      # pos per col
        out_specs=(pl.BlockSpec((1, 1, tn), lambda i, j: (i, 0, 0)),
                   pl.BlockSpec((1, 1, tn), lambda i, j: (i, 0, 0))),
        compiler_params=pltpu.CompilerParams(
            dimension_semantics=("parallel", "arbitrary"),
            vmem_limit_bytes=vmem_limit),
    )(x_pad, y_pad, x_stat, y_stat, pos_row, pos_col)
    return jnp.sum(out_xy), jnp.sum(out_yx)


# ---------------------------------------------------------------------------
# Kernel B (k < B): masked/negated distance matrix + its transpose, emitted
# in one pass (in-kernel XLU transpose), padding/diag masked in-kernel so the
# XLA top_k runs directly on the padded matrices without transpose/slice.
# ---------------------------------------------------------------------------
def _neg_dist_kernel(x_ref, y_ref, xstat_ref, ystat_ref, m_ref, mt_ref, *,
                     distance_type, d_eps_sq, b, tb):
    i = pl.program_id(0)
    j = pl.program_id(1)
    dist = _tile_distance(x_ref[...], y_ref[...], xstat_ref[...], ystat_ref[...],
                          distance_type=distance_type, d_eps_sq=d_eps_sq)
    rows = i * tb + jax.lax.broadcasted_iota(jnp.int32, (tb, tb), 0)
    cols = j * tb + jax.lax.broadcasted_iota(jnp.int32, (tb, tb), 1)
    valid = (rows != cols) & (rows < b) & (cols < b)
    md = jnp.where(valid, -dist, -_BIG)
    m_ref[...] = md
    # NOTE: could be emitted in bf16 to halve HBM traffic; kept f32 so the
    # top-k selection/values match the reference within test tolerance.
    mt_ref[...] = md.T


def _neg_dist_pallas(x_pad, y_pad, x_stat, y_stat, *, distance_type, d_eps_sq,
                     b, tb, vmem_limit):
    b_pad, d_pad = x_pad.shape
    n = b_pad // tb
    kernel = functools.partial(_neg_dist_kernel, distance_type=distance_type,
                               d_eps_sq=float(d_eps_sq), b=b, tb=tb)
    return pl.pallas_call(
        kernel,
        out_shape=(jax.ShapeDtypeStruct((b_pad, b_pad), jnp.float32),
                   jax.ShapeDtypeStruct((b_pad, b_pad), jnp.float32)),
        grid=(n, n),
        in_specs=[pl.BlockSpec((tb, d_pad), lambda i, j: (i, 0)),
                  pl.BlockSpec((tb, d_pad), lambda i, j: (j, 0)),
                  pl.BlockSpec((tb, 1), lambda i, j: (i, 0)),
                  pl.BlockSpec((1, tb), lambda i, j: (0, j))],
        out_specs=(pl.BlockSpec((tb, tb), lambda i, j: (i, j)),
                   pl.BlockSpec((tb, tb), lambda i, j: (j, i))),   # transposed output
        compiler_params=pltpu.CompilerParams(
            dimension_semantics=("parallel", "parallel"),
            vmem_limit_bytes=vmem_limit),
    )(x_pad, y_pad, x_stat, y_stat)


# ---------------------------------------------------------------------------
# Forward pass (matches InterModalRankingLoss.forward)
# ---------------------------------------------------------------------------
def inter_modal_ranking_loss(x_embed, y_embed, *, margin=0.5,
                             distance_type="L2", topk_num=1024,
                             block_rows=None, block_cols=None):
    if distance_type not in ("L2", "COS"):
        raise ValueError(f"unknown distance_type: {distance_type}")
    if x_embed.shape != y_embed.shape:
        raise ValueError("x_embed and y_embed must have the same shape")
    y_embed = y_embed.astype(x_embed.dtype)

    b, d = x_embed.shape
    k = min(int(topk_num), b)

    d_pad = max(_round_up(d, 128), 128)
    b_pad, tm = _batch_pad_and_row_tile(b)
    if block_rows is not None:
        br = int(block_rows)
        if br >= 8 and br % 8 == 0 and b_pad % br == 0:
            tm = br

    itemsize = x_embed.dtype.itemsize
    budget = _vmem_budget_bytes()

    # ---- O(B*D) glue in f32: positives, L2 row/col stats, pad sentinels ----
    xf = x_embed.astype(jnp.float32)
    yf = y_embed.astype(jnp.float32)
    xy_diag = jnp.sum(xf * yf, axis=1)
    if distance_type == "L2":
        x_stat = jnp.sum(xf * xf + (2.0 * _EPS) * xf, axis=1)
        y_stat = jnp.sum(yf * yf - (2.0 * _EPS) * yf, axis=1)
        diff = xf - yf + _EPS
        pos = jnp.sqrt(jnp.sum(diff * diff, axis=-1))          # direct form (exact)
        stat_pad_val = _BIG * _BIG                              # sqrt -> ~1e6
        d_eps_sq = d * _EPS * _EPS                              # logical D
    else:  # COS
        x_stat = jnp.zeros((b,), jnp.float32)
        y_stat = jnp.zeros((b,), jnp.float32)
        pos = -xy_diag
        stat_pad_val = _BIG
        d_eps_sq = 0.0

    # ---- pad rows (zeros) and features (zeros, exact for both distances) ----
    x_p = jnp.pad(x_embed, ((0, b_pad - b), (0, d_pad - d)))
    y_p = jnp.pad(y_embed, ((0, b_pad - b), (0, d_pad - d)))
    x_stat_col = jnp.pad(x_stat, (0, b_pad - b),
                         constant_values=stat_pad_val)[:, None]        # [B_pad, 1]
    y_stat_row = jnp.pad(y_stat, (0, b_pad - b),
                         constant_values=stat_pad_val)[None, :]        # [1, B_pad]

    if k == b:
        # topk_num >= batch (module default): every off-diagonal entry is a
        # selected negative -> distance + hinge + reduction fuse in one kernel
        # and the [B, B] matrix never reaches HBM.  Padded rows/cols are
        # neutralized by sentinels (pos = -1e6, stat -> dist ~ 1e6).
        pos_row = jnp.pad(pos, (0, b_pad - b), constant_values=-_BIG)[:, None]
        pos_col = jnp.pad(pos, (0, b_pad - b), constant_values=-_BIG)[None, :]
        tn = _pick_col_tile(b_pad, tm, d_pad, itemsize, budget)
        if block_cols is not None:
            bc = int(block_cols)
            if bc >= 128 and bc % 128 == 0 and b_pad % bc == 0:
                tn = bc
        sum_xy, sum_yx = _fused_loss_pallas(
            x_p, y_p, x_stat_col, y_stat_row, pos_row, pos_col,
            distance_type=distance_type, margin=margin, d_eps_sq=d_eps_sq,
            tm=tm, tn=tn, vmem_limit=budget)

        # Diagonal correction: the kernel summed unmasked tiles; subtract the
        # diagonal hinge computed in f32 with the same expanded form (its
        # contribution is 0 in the reference because dist_neg's diagonal is
        # +1e6).  Matches the kernel to ~f32 rounding for f32 inputs.
        if distance_type == "L2":
            sq_diag = x_stat + y_stat - 2.0 * xy_diag + d_eps_sq
            d_diag = jnp.sqrt(jnp.maximum(sq_diag, 0.0))
        else:
            d_diag = -xy_diag
        corr = jnp.sum(jnp.maximum(margin + pos - d_diag, 0.0))
        denom = float(b * k)
        return (sum_xy - corr) / denom, (sum_yx - corr) / denom

    # ---- k < B: a real top-k selection is required --------------------------
    m, mt = _neg_dist_pallas(x_p, y_p, x_stat_col, y_stat_row,
                             distance_type=distance_type, d_eps_sq=d_eps_sq,
                             b=b, tb=tm, vmem_limit=budget)
    # TODO(synk): torch.topk has no clean Pallas TPU equivalent; a streaming
    # per-row top-k inside the kernel would avoid materializing the [B, B]
    # matrices entirely.  Selection stays in jax.lax.top_k for now.
    neg_xy = -jax.lax.top_k(m, k)[0][:b]     # k smallest distances per x row
    neg_yx = -jax.lax.top_k(mt, k)[0][:b]    # k smallest distances per y column
    denom = float(b * k)
    loss_xy = jnp.sum(jnp.maximum(margin + pos[:, None] - neg_xy, 0.0)) / denom
    loss_yx = jnp.sum(jnp.maximum(margin + pos[:, None] - neg_yx, 0.0)) / denom
    return loss_xy, loss_yx


# ---------------------------------------------------------------------------
# Pure-JAX reference (direct translation of the PyTorch math)
# ---------------------------------------------------------------------------
def _reference(x, y, margin=0.5, distance_type="L2", topk_num=1024):
    b = x.shape[0]
    k = min(topk_num, b)
    if distance_type == "L2":
        diff = x[:, None, :] - y[None, :, :] + _EPS
        dist = jnp.sqrt(jnp.sum(diff * diff, axis=-1))
    else:
        dist = -x @ y.T
    eye = jnp.eye(b, dtype=bool)
    dist_pos = jnp.where(eye, dist, -_BIG)
    dist_neg = jnp.where(eye, _BIG, dist)
    pos = jnp.max(dist_pos, axis=1, keepdims=True)
    neg_xy = -jax.lax.top_k(-dist_neg, k)[0]
    neg_yx = -jax.lax.top_k(-dist_neg.T, k)[0]
    loss_xy = jnp.mean(jnp.maximum(margin + pos - neg_xy, 0.0))
    loss_yx = jnp.mean(jnp.maximum(margin + pos - neg_yx, 0.0))
    return loss_xy, loss_yx


if __name__ == "__main__":
    key = jax.random.PRNGKey(0)
    kx, ky = jax.random.split(key)
    B, D = 8, 32
    x_embed = jax.random.normal(kx, (B, D), dtype=jnp.float32)
    y_embed = jax.random.normal(ky, (B, D), dtype=jnp.float32)

    cases = [
        dict(margin=0.5, distance_type="L2", topk_num=1024),   # fused path (k == B)
        dict(margin=0.5, distance_type="COS", topk_num=1024),  # fused path, COS
        dict(margin=0.5, distance_type="L2", topk_num=4),      # top-k path (k < B)
        dict(margin=0.5, distance_type="COS", topk_num=3),     # top-k path, COS
    ]
    for cfg in cases:
        lxy, lyx = inter_modal_ranking_loss(x_embed, y_embed, **cfg)
        lxy = jax.block_until_ready(lxy)
        lyx = jax.block_until_ready(lyx)
        rxy, ryx = _reference(x_embed, y_embed, **cfg)
        np.testing.assert_allclose(np.asarray(lxy), np.asarray(rxy),
                                   rtol=1e-3, atol=1e-3)
        np.testing.assert_allclose(np.asarray(lyx), np.asarray(ryx),
                                   rtol=1e-3, atol=1e-3)

    # Non-aligned batch exercises the row/col padding (sentinel) handling.
    B2 = 6
    for cfg in (dict(margin=0.5, distance_type="L2", topk_num=1024),
                dict(margin=0.5, distance_type="L2", topk_num=4)):
        lxy, lyx = inter_modal_ranking_loss(x_embed[:B2], y_embed[:B2], **cfg)
        lxy = jax.block_until_ready(lxy)
        lyx = jax.block_until_ready(lyx)
        rxy, ryx = _reference(x_embed[:B2], y_embed[:B2], **cfg)
        np.testing.assert_allclose(np.asarray(lxy), np.asarray(rxy),
                                   rtol=1e-3, atol=1e-3)
        np.testing.assert_allclose(np.asarray(lyx), np.asarray(ryx),
                                   rtol=1e-3, atol=1e-3)

    print("KERNEL_OK")
</pallas_src>

<mosaic_0001>
module attributes {stable_mosaic.version = 11 : i64} {
  func.func @_fused_loss_kernel(%arg0: i32, %arg1: i32, %arg2: memref<128x128xf32, #tpu.memory_space<vmem>>, %arg3: memref<128x128xf32, #tpu.memory_space<vmem>>, %arg4: memref<128x1xf32, #tpu.memory_space<vmem>>, %arg5: memref<1x128xf32, #tpu.memory_space<vmem>>, %arg6: memref<128x1xf32, #tpu.memory_space<vmem>>, %arg7: memref<1x128xf32, #tpu.memory_space<vmem>>, %arg8: memref<1x1x128xf32, #tpu.memory_space<vmem>>, %arg9: memref<1x1x128xf32, #tpu.memory_space<vmem>>) attributes {dimension_semantics = [#tpu.dimension_semantics<parallel>, #tpu.dimension_semantics<arbitrary>], iteration_bounds = array<i64: 1, 1>, scalar_prefetch = 0 : i64, scratch_operands = 0 : i64, tpu.core_type = #tpu.core_type<tc>, window_params = [{transform_indices = @transform_0, window_bounds = array<i64: 128, 128>}, {transform_indices = @transform_1, window_bounds = array<i64: 128, 128>}, {transform_indices = @transform_2, window_bounds = array<i64: 128, 1>}, {transform_indices = @transform_3, window_bounds = array<i64: 1, 128>}, {transform_indices = @transform_4, window_bounds = array<i64: 128, 1>}, {transform_indices = @transform_5, window_bounds = array<i64: 1, 128>}, {transform_indices = @transform_6, window_bounds = array<i64: 1, 1, 128>}, {transform_indices = @transform_7, window_bounds = array<i64: 1, 1, 128>}]} {
    %c0_i32 = arith.constant 0 : i32
    %0 = arith.cmpi eq, %arg1, %c0_i32 : i32
    %1 = arith.extui %0 : i1 to i32
    %c0_i32_0 = arith.constant 0 : i32
    %2 = arith.cmpi ne, %1, %c0_i32_0 : i32
    scf.if %2 {
      %cst_33 = arith.constant 0.000000e+00 : f32
      %45 = vector.broadcast %cst_33 : f32 to vector<1x1x128xf32>
      %c0_34 = arith.constant 0 : index
      %c0_35 = arith.constant 0 : index
      %c0_36 = arith.constant 0 : index
      %46 = vector.load %arg8[%c0_34, %c0_35, %c0_36] : memref<1x1x128xf32, #tpu.memory_space<vmem>>, vector<1x1x128xf32>
      tpu.vector_store %arg8[%c0_34, %c0_35, %c0_36], %45 {strides = array<i32>} : memref<1x1x128xf32, #tpu.memory_space<vmem>>, vector<1x1x128xf32>,
      %cst_37 = arith.constant 0.000000e+00 : f32
      %47 = vector.broadcast %cst_37 : f32 to vector<1x1x128xf32>
      %c0_38 = arith.constant 0 : index
      %c0_39 = arith.constant 0 : index
      %c0_40 = arith.constant 0 : index
      %48 = vector.load %arg9[%c0_38, %c0_39, %c0_40] : memref<1x1x128xf32, #tpu.memory_space<vmem>>, vector<1x1x128xf32>
      tpu.vector_store %arg9[%c0_38, %c0_39, %c0_40], %47 {strides = array<i32>} : memref<1x1x128xf32, #tpu.memory_space<vmem>>, vector<1x1x128xf32>,
    } else {
    }
    %c0 = arith.constant 0 : index
    %c0_1 = arith.constant 0 : index
    %3 = vector.load %arg2[%c0, %c0_1] : memref<128x128xf32, #tpu.memory_space<vmem>>, vector<128x128xf32>
    %c0_2 = arith.constant 0 : index
    %c0_3 = arith.constant 0 : index
    %4 = vector.load %arg3[%c0_2, %c0_3] : memref<128x128xf32, #tpu.memory_space<vmem>>, vector<128x128xf32>
    %c0_4 = arith.constant 0 : index
    %c0_5 = arith.constant 0 : index
    %5 = vector.load %arg4[%c0_4, %c0_5] : memref<128x1xf32, #tpu.memory_space<vmem>>, vector<128x1xf32>
    %c0_6 = arith.constant 0 : index
    %c0_7 = arith.constant 0 : index
    %6 = vector.load %arg5[%c0_6, %c0_7] : memref<1x128xf32, #tpu.memory_space<vmem>>, vector<1x128xf32>
    %cst = arith.constant dense<0.000000e+00> : vector<128x128xf32>
    %7 = tpu.matmul %3, %4, %cst {dimension_numbers = #tpu.dot_dimension_numbers<[1], [1], [0], [0], [0, 0, 1, 0], [], []>} : vector<128x128xf32>, vector<128x128xf32>, vector<128x128xf32> -> vector<128x128xf32>
    %8 = vector.broadcast %5 : vector<128x1xf32> to vector<128x128xf32>
    %9 = vector.broadcast %6 : vector<1x128xf32> to vector<128x128xf32>
    %10 = arith.addf %8, %9 : vector<128x128xf32>
    %cst_8 = arith.constant 2.000000e+00 : f32
    %11 = vector.broadcast %cst_8 : f32 to vector<128x128xf32>
    %12 = arith.mulf %11, %7 : vector<128x128xf32>
    %13 = arith.subf %10, %12 : vector<128x128xf32>
    %cst_9 = arith.constant 3.200000e-11 : f32
    %14 = vector.broadcast %cst_9 : f32 to vector<128x128xf32>
    %15 = arith.addf %13, %14 : vector<128x128xf32>
    %cst_10 = arith.constant 0.000000e+00 : f32
    %16 = vector.broadcast %cst_10 : f32 to vector<128x128xf32>
    %17 = arith.maximumf %15, %16 : vector<128x128xf32>
    %18 = math.sqrt %17 : vector<128x128xf32>
    %c0_11 = arith.constant 0 : index
    %c0_12 = arith.constant 0 : index
    %19 = vector.load %arg6[%c0_11, %c0_12] : memref<128x1xf32, #tpu.memory_space<vmem>>, vector<128x1xf32>
    %cst_13 = arith.constant 5.000000e-01 : f32
    %20 = vector.broadcast %cst_13 : f32 to vector<128x1xf32>
    %21 = arith.addf %20, %19 : vector<128x1xf32>
    %22 = vector.broadcast %21 : vector<128x1xf32> to vector<128x128xf32>
    %23 = arith.subf %22, %18 : vector<128x128xf32>
    %cst_14 = arith.constant 0.000000e+00 : f32
    %24 = vector.broadcast %cst_14 : f32 to vector<128x128xf32>
    %25 = arith.maximumf %23, %24 : vector<128x128xf32>
    %c0_15 = arith.constant 0 : index
    %c0_16 = arith.constant 0 : index
    %26 = vector.load %arg7[%c0_15, %c0_16] : memref<1x128xf32, #tpu.memory_space<vmem>>, vector<1x128xf32>
    %cst_17 = arith.constant 5.000000e-01 : f32
    %27 = vector.broadcast %cst_17 : f32 to vector<1x128xf32>
    %28 = arith.addf %27, %26 : vector<1x128xf32>
    %29 = vector.broadcast %28 : vector<1x128xf32> to vector<128x128xf32>
    %30 = arith.subf %29, %18 : vector<128x128xf32>
    %cst_18 = arith.constant 0.000000e+00 : f32
    %31 = vector.broadcast %cst_18 : f32 to vector<128x128xf32>
    %32 = arith.maximumf %30, %31 : vector<128x128xf32>
    %c0_19 = arith.constant 0 : index
    %c0_20 = arith.constant 0 : index
    %c0_21 = arith.constant 0 : index
    %33 = vector.load %arg8[%c0_19, %c0_20, %c0_21] : memref<1x1x128xf32, #tpu.memory_space<vmem>>, vector<1x1x128xf32>
    %cst_22 = arith.constant dense<0.000000e+00> : vector<128xf32>
    %34 = vector.multi_reduction <add>, %25, %cst_22 [0] : vector<128x128xf32> to vector<128xf32>
    %35 = vector.shape_cast %34 : vector<128xf32> to vector<1x128xf32>
    %36 = vector.shape_cast %35 : vector<1x128xf32> to vector<1x1x128xf32>
    %37 = arith.addf %33, %36 : vector<1x1x128xf32>
    %c0_23 = arith.constant 0 : index
    %c0_24 = arith.constant 0 : index
    %c0_25 = arith.constant 0 : index
    %38 = vector.load %arg8[%c0_23, %c0_24, %c0_25] : memref<1x1x128xf32, #tpu.memory_space<vmem>>, vector<1x1x128xf32>
    tpu.vector_store %arg8[%c0_23, %c0_24, %c0_25], %37 {strides = array<i32>} : memref<1x1x128xf32, #tpu.memory_space<vmem>>, vector<1x1x128xf32>,
    %c0_26 = arith.constant 0 : index
    %c0_27 = arith.constant 0 : index
    %c0_28 = arith.constant 0 : index
    %39 = vector.load %arg9[%c0_26, %c0_27, %c0_28] : memref<1x1x128xf32, #tpu.memory_space<vmem>>, vector<1x1x128xf32>
    %cst_29 = arith.constant dense<0.000000e+00> : vector<128xf32>
    %40 = vector.multi_reduction <add>, %32, %cst_29 [0] : vector<128x128xf32> to vector<128xf32>
    %41 = vector.shape_cast %40 : vector<128xf32> to vector<1x128xf32>
    %42 = vector.shape_cast %41 : vector<1x128xf32> to vector<1x1x128xf32>
    %43 = arith.addf %39, %42 : vector<1x1x128xf32>
    %c0_30 = arith.constant 0 : index
    %c0_31 = arith.constant 0 : index
    %c0_32 = arith.constant 0 : index
    %44 = vector.load %arg9[%c0_30, %c0_31, %c0_32] : memref<1x1x128xf32, #tpu.memory_space<vmem>>, vector<1x1x128xf32>
    tpu.vector_store %arg9[%c0_30, %c0_31, %c0_32], %43 {strides = array<i32>} : memref<1x1x128xf32, #tpu.memory_space<vmem>>, vector<1x1x128xf32>,
    return
  }
  func.func @transform_0(%arg0: i32, %arg1: i32) -> (i32, i32) {
    %c0_i32 = arith.constant 0 : i32
    %c0_i32_0 = arith.constant 0 : i32
    return %arg0, %c0_i32 : i32, i32
  }
  func.func @transform_1(%arg0: i32, %arg1: i32) -> (i32, i32) {
    %c0_i32 = arith.constant 0 : i32
    %c0_i32_0 = arith.constant 0 : i32
    return %arg1, %c0_i32 : i32, i32
  }
  func.func @transform_2(%arg0: i32, %arg1: i32) -> (i32, i32) {
    %c0_i32 = arith.constant 0 : i32
    %c0_i32_0 = arith.constant 0 : i32
    return %arg0, %c0_i32 : i32, i32
  }
  func.func @transform_3(%arg0: i32, %arg1: i32) -> (i32, i32) {
    %c0_i32 = arith.constant 0 : i32
    %c0_i32_0 = arith.constant 0 : i32
    return %c0_i32, %arg1 : i32, i32
  }
  func.func @transform_4(%arg0: i32, %arg1: i32) -> (i32, i32) {
    %c0_i32 = arith.constant 0 : i32
    %c0_i32_0 = arith.constant 0 : i32
    return %arg0, %c0_i32 : i32, i32
  }
  func.func @transform_5(%arg0: i32, %arg1: i32) -> (i32, i32) {
    %c0_i32 = arith.constant 0 : i32
    %c0_i32_0 = arith.constant 0 : i32
    return %c0_i32, %arg1 : i32, i32
  }
  func.func @transform_6(%arg0: i32, %arg1: i32) -> (i32, i32, i32) {
    %c0_i32 = arith.constant 0 : i32
    %c0_i32_0 = arith.constant 0 : i32
    %c0_i32_1 = arith.constant 0 : i32
    return %arg0, %c0_i32, %c0_i32_0 : i32, i32, i32
  }
  func.func @transform_7(%arg0: i32, %arg1: i32) -> (i32, i32, i32) {
    %c0_i32 = arith.constant 0 : i32
    %c0_i32_0 = arith.constant 0 : i32
    %c0_i32_1 = arith.constant 0 : i32
    return %arg0, %c0_i32, %c0_i32_0 : i32, i32, i32
  }
}

</mosaic_0001>

<bundles_post_ra>
// kernel: tpu_custom_call.1
= control target key start
LH: loop header
LB: loop body
LE: loop exit
PB: predicated region body
PF: predicated region fallthrough
CT: control target
= control target key end

     0   :  { %13 = vsyncpa [#allocation3], 0  ;;  %v988_v5 = vmov 0   ;;  %s1490_s0 = inlined_call_operand.vmem [shape: f32[128,128], index: 0, kind: input, shape index: {}]   ;;  %s1491_s1 = inlined_call_operand.vmem [shape: f32[128,128], index: 1, kind: input, shape index: {}]   ;;  %s1492_s2 = inlined_call_operand.vmem [shape: f32[128,1], index: 2, kind: input, shape index: {}]   ;;  %s1493_s3 = inlined_call_operand.vmem [shape: f32[1,128], index: 3, kind: input, shape index: {}]   ;;  %s1494_s4 = inlined_call_operand.vmem [shape: f32[128,1], index: 4, kind: input, shape index: {}]   ;;  %s1495_s5 = inlined_call_operand.vmem [shape: f32[1,128], index: 5, kind: input, shape index: {}]   ;;  %s1496_s6 = inlined_call_operand.hbm [shape: f32[1,1,128], index: 6, kind: output, shape index: {0}]   ;;  %s1497_s7 = inlined_call_operand.hbm [shape: f32[1,1,128], index: 7, kind: output, shape index: {1}]  }
   0x1   :  { %v49_v0 = vld [vmem:[%s1491_s1] sm:$0xff]  ;;  %v50_v1 = vld [vmem:[%s1491_s1 + $0x8] sm:$0xff]  ;;  %v51_v2 = vld [vmem:[%s1491_s1 + $0x10] sm:$0xff]  ;;  %906 = vset.pattern.permute.xlu0 %v988_v5  ;;  %907 = vset.pattern.permute.xlu1 %v988_v5 }
   0x2   :  { %v854_v3 = vpack.c.bf16 %v50_v1, %v49_v0  ;;  %v52_v4 = vld [vmem:[%s1491_s1 + $0x18] sm:$0xff]  ;;  %v33_v7 = vld [vmem:[%s1490_s0] sm:$0xff]  ;;  %v54_v10 = vld [vmem:[%s1491_s1 + $0x28] sm:$0xff] }
   0x3   :  { %v858_v6 = vpack.c.bf16 %v52_v4, %v51_v2  ;;  %v41_v8 = vld [vmem:[%s1490_s0 + $0x40] sm:$0xff]  ;;  %830 = vmatprep.mubr.f32.mxu0 %v33_v7  ;;  %v67_v13 = vld [vmem:[%s1492_s2 + $0x10] sm:$0xff]  ;;  %v66_v14 = vld [vmem:[%s1492_s2 + $0x8] sm:$0xff] }
   0x4   :  { %855 = vmatprep.subr.bf16.mxu0 %v854_v3  ;;  %886 = vmatprep.subr.bf16.mxu1 %v854_v3  ;;  %v53_v9 = vld [vmem:[%s1491_s1 + $0x20] sm:$0xff]  ;;  %v55_v15 = vld [vmem:[%s1491_s1 + $0x30] sm:$0xff]  ;;  %v56_v16 = vld [vmem:[%s1491_s1 + $0x38] sm:$0xff] }
   0x5   :  { %857 = vmatpush3.bf16.xpose.msra.mxu0 %v854_v3  ;;  %894 = vmatpush3.bf16.xpose.msra.mxu1 %v854_v3  ;;  %v862_v11 = vpack.c.bf16 %v54_v10, %v53_v9  ;;  %v65_v12 = vld [vmem:[%s1492_s2] sm:$0xff]  ;;  %v68_v17 = vld [vmem:[%s1492_s2 + $0x18] sm:$0xff]  ;;  %v866_v19 = vpack.c.bf16 %v56_v16, %v55_v15  ;;  %v70_v20 = vld [vmem:[%s1492_s2 + $0x28] sm:$0xff] }
   0x6   :  { %859 = vmatprep.subr.bf16.mxu0 %v858_v6  ;;  %887 = vmatprep.subr.bf16.mxu1 %v858_v6  ;;  %v69_v18 = vld [vmem:[%s1492_s2 + $0x20] sm:$0xff]  ;;  %v71_v21 = vld [vmem:[%s1492_s2 + $0x30] sm:$0xff]  ;;  %v58_v23 = vld [vmem:[%s1491_s1 + $0x48] sm:$0xff] }
   0x7   :  { %842 = vmatprep.mubr.f32.mxu1 %v41_v8  ;;  %229 = vperm.xlu0 %906, %v65_v12   ;;  %v57_v22 = vld [vmem:[%s1491_s1 + $0x40] sm:$0xff] }
   0x8   :  { %239 = vperm.xlu1 %907, %v67_v13  }
   0xb   :  { %234 = vperm.xlu0 %906, %v66_v14  }
   0xc   :  { %244 = vperm.xlu1 %907, %v68_v17  }
   0xd   :  { %861 = vmatpush3.bf16.xpose.msra.mxu0 %v858_v6  ;;  %895 = vmatpush3.bf16.xpose.msra.mxu1 %v858_v6 }
   0xe   :  { %863 = vmatprep.subr.bf16.mxu0 %v862_v11  ;;  %888 = vmatprep.subr.bf16.mxu1 %v862_v11 }
   0xf   :  { %249 = vperm.xlu0 %906, %v69_v18  }
  0x10   :  { %254 = vperm.xlu1 %907, %v70_v20  }
  0x15   :  { %865 = vmatpush3.bf16.xpose.msra.mxu0 %v862_v11  ;;  %896 = vmatpush3.bf16.xpose.msra.mxu1 %v862_v11 }
  0x16   :  { %867 = vmatprep.subr.bf16.mxu0 %v866_v19  ;;  %889 = vmatprep.subr.bf16.mxu1 %v866_v19 }
  0x17   :  { %14 = vsyncpa [#allocation5], 0  ;;  %259 = vperm.xlu0 %906, %v71_v21   ;;  %v72_v24 = vld [vmem:[%s1492_s2 + $0x38] sm:$0xff]  ;;  %v73_v25 = vld [vmem:[%s1492_s2 + $0x40] sm:$0xff]  ;;  %v870_v26 = vpack.c.bf16 %v58_v23, %v57_v22  ;;  %s991_s12 = smov [#allocation4]  }
  0x18   :  { %264 = vperm.xlu1 %907, %v72_v24   ;;  %v74_v27 = vld [vmem:[%s1492_s2 + $0x48] sm:$0xff]  ;;  %v75_v28 = vld [vmem:[%s1492_s2 + $0x50] sm:$0xff]  ;;  %v60_v30 = vld [vmem:[%s1491_s1 + $0x58] sm:$0xff]  ;;  %s753_s13 = sshll.u32 %s991_s12, 4  ;;  %s1458_s13 = int_to_ptr.vmem [resolvable:$true] %s753_s13 }
  0x19   :  { %v59_v29 = vld [vmem:[%s1491_s1 + $0x50] sm:$0xff]  ;;  %v76_v31 = vld [vmem:[%s1492_s2 + $0x58] sm:$0xff]  ;;  %v505_v32 = vld [vmem:[%s1494_s4] sm:$0xff] }
  0x1a   :  { %v77_v33 = vld [vmem:[%s1492_s2 + $0x60] sm:$0xff]  ;;  %v506_v34 = vld [vmem:[%s1494_s4 + $0x8] sm:$0xff]  ;;  %v874_v35 = vpack.c.bf16 %v60_v30, %v59_v29  ;;  %v521_v36 = vadd.f32 0.5, %v505_v32  ;;  %v507_v38 = vld [vmem:[%s1494_s4 + $0x10] sm:$0xff] }
  0x1b   :  { %269 = vperm.xlu0 %906, %v73_v25   ;;  %v522_v37 = vadd.f32 0.5, %v506_v34  ;;  %v61_v39 = vld [vmem:[%s1491_s1 + $0x60] sm:$0xff]  ;;  %v62_v40 = vld [vmem:[%s1491_s1 + $0x68] sm:$0xff]  ;;  %v523_v42 = vadd.f32 0.5, %v507_v38  ;;  %v508_v43 = vld [vmem:[%s1494_s4 + $0x18] sm:$0xff]  ;;  %v989_v25 = vmov 0.0  }
  0x1c   :  { %274 = vperm.xlu1 %907, %v74_v27   ;;  %v78_v41 = vld [vmem:[%s1492_s2 + $0x68] sm:$0xff]  ;;  %v878_v44 = vpack.c.bf16 %v62_v40, %v61_v39  ;;  %v79_v45 = vld [vmem:[%s1492_s2 + $0x70] sm:$0xff]  ;;  %v524_v46 = vadd.f32 0.5, %v508_v43  ;;  %v509_v47 = vld [vmem:[%s1494_s4 + $0x20] sm:$0xff]  ;;  %31 = vst [vmem:[#allocation2] sm:$0x1] %v989_v25 }
  0x1d   :  { %869 = vmatpush3.bf16.xpose.msra.mxu0 %v866_v19  ;;  %897 = vmatpush3.bf16.xpose.msra.mxu1 %v866_v19  ;;  %v63_v48 = vld [vmem:[%s1491_s1 + $0x70] sm:$0xff]  ;;  %v64_v49 = vld [vmem:[%s1491_s1 + $0x78] sm:$0xff]  ;;  %v525_v51 = vadd.f32 0.5, %v509_v47  ;;  %v510_v52 = vld [vmem:[%s1494_s4 + $0x28] sm:$0xff]  ;;  %32 = vst [vmem:[#allocation4] sm:$0x1] %v989_v25 }
  0x1e   :  { %871 = vmatprep.subr.bf16.mxu0 %v870_v26  ;;  %890 = vmatprep.subr.bf16.mxu1 %v870_v26  ;;  %v80_v50 = vld [vmem:[%s1492_s2 + $0x78] sm:$0xff]  ;;  %v511_v53 = vld [vmem:[%s1494_s4 + $0x30] sm:$0xff]  ;;  %v882_v54 = vpack.c.bf16 %v64_v49, %v63_v48  ;;  %v526_v55 = vadd.f32 0.5, %v510_v52  ;;  %v513_v58 = vld [vmem:[%s1494_s4 + $0x40] sm:$0xff] }
  0x1f   :  { %279 = vperm.xlu0 %906, %v75_v28   ;;  %v527_v56 = vadd.f32 0.5, %v511_v53  ;;  %v512_v57 = vld [vmem:[%s1494_s4 + $0x38] sm:$0xff]  ;;  %v529_v60 = vadd.f32 0.5, %v513_v58  ;;  %v514_v61 = vld [vmem:[%s1494_s4 + $0x48] sm:$0xff]  ;;  %v515_v62 = vld [vmem:[%s1494_s4 + $0x50] sm:$0xff] }
  0x20   :  { %284 = vperm.xlu1 %907, %v76_v31   ;;  %v528_v59 = vadd.f32 0.5, %v512_v57  ;;  %v530_v63 = vadd.f32 0.5, %v514_v61  ;;  %v531_v0 = vadd.f32 0.5, %v515_v62  ;;  %v516_v1 = vld [vmem:[%s1494_s4 + $0x58] sm:$0xff]  ;;  %v517_v3 = vld [vmem:[%s1494_s4 + $0x60] sm:$0xff]  ;;  %v518_v4 = vld [vmem:[%s1494_s4 + $0x68] sm:$0xff] }
  0x21   :  { %v532_v2 = vadd.f32 0.5, %v516_v1  ;;  %v34_v5 = vld [vmem:[%s1490_s0 + $0x8] sm:$0xff]  ;;  %v35_v7 = vld [vmem:[%s1490_s0 + $0x10] sm:$0xff]  ;;  %v533_v9 = vadd.f32 0.5, %v517_v3  ;;  %v534_v10 = vadd.f32 0.5, %v518_v4  ;;  %v520_v12 = vld [vmem:[%s1494_s4 + $0x78] sm:$0xff] }
  0x22   :  { %v42_v6 = vld [vmem:[%s1490_s0 + $0x48] sm:$0xff]  ;;  %v43_v8 = vld [vmem:[%s1490_s0 + $0x50] sm:$0xff]  ;;  %v36_v13 = vld [vmem:[%s1490_s0 + $0x18] sm:$0xff]  ;;  %v536_v18 = vadd.f32 0.5, %v520_v12 }
  0x23   :  { %289 = vperm.xlu0 %906, %v77_v33   ;;  %v519_v11 = vld [vmem:[%s1494_s4 + $0x70] sm:$0xff]  ;;  %v44_v14 = vld [vmem:[%s1490_s0 + $0x58] sm:$0xff]  ;;  %v37_v15 = vld [vmem:[%s1490_s0 + $0x20] sm:$0xff] }
  0x24   :  { %539 = vperm.xlu1 %907, %v521_v36   ;;  %v45_v16 = vld [vmem:[%s1490_s0 + $0x60] sm:$0xff]  ;;  %v535_v17 = vadd.f32 0.5, %v519_v11  ;;  %v38_v19 = vld [vmem:[%s1490_s0 + $0x28] sm:$0xff]  ;;  %v39_v21 = vld [vmem:[%s1490_s0 + $0x30] sm:$0xff] }
  0x25   :  { %873 = vmatpush3.bf16.xpose.msra.mxu0 %v870_v26  ;;  %898 = vmatpush3.bf16.xpose.msra.mxu1 %v870_v26  ;;  %v46_v20 = vld [vmem:[%s1490_s0 + $0x68] sm:$0xff]  ;;  %v47_v22 = vld [vmem:[%s1490_s0 + $0x70] sm:$0xff]  ;;  %v40_v23 = vld [vmem:[%s1490_s0 + $0x38] sm:$0xff] }
  0x26   :  { %875 = vmatprep.subr.bf16.mxu0 %v874_v35  ;;  %891 = vmatprep.subr.bf16.mxu1 %v874_v35  ;;  %v48_v24 = vld [vmem:[%s1490_s0 + $0x78] sm:$0xff]  ;;  %v1233_v34 = vld [vmem:[%s1493_s3] ss:$0 sm:$0xff] }
  0x27   :  { %544 = vperm.xlu0 %906, %v522_v37  }
  0x28   :  { %294 = vperm.xlu1 %907, %v78_v41  }
  0x2b   :  { %549 = vperm.xlu0 %906, %v523_v42  }
  0x2c   :  { %299 = vperm.xlu1 %907, %v79_v45  }
  0x2d   :  { %877 = vmatpush3.bf16.xpose.msra.mxu0 %v874_v35  ;;  %899 = vmatpush3.bf16.xpose.msra.mxu1 %v874_v35 }
  0x2e   :  { %879 = vmatprep.subr.bf16.mxu0 %v878_v44  ;;  %892 = vmatprep.subr.bf16.mxu1 %v878_v44 }
  0x2f   :  { %554 = vperm.xlu0 %906, %v524_v46  }
  0x30   :  { %304 = vperm.xlu1 %907, %v80_v50  }
  0x33   :  { %559 = vperm.xlu0 %906, %v525_v51  }
  0x34   :  { %564 = vperm.xlu1 %907, %v526_v55  }
  0x35   :  { %881 = vmatpush3.bf16.xpose.msra.mxu0 %v878_v44  ;;  %900 = vmatpush3.bf16.xpose.msra.mxu1 %v878_v44 }
  0x36   :  { %883 = vmatprep.subr.bf16.mxu0 %v882_v54  ;;  %893 = vmatprep.subr.bf16.mxu1 %v882_v54 }
  0x37   :  { %569 = vperm.xlu0 %906, %v527_v56   ;;  %v652_v56 = vlaneseq }
  0x38   :  { %574 = vperm.xlu1 %907, %v528_v59  }
  0x3b   :  { %579 = vperm.xlu0 %906, %v529_v60  }
  0x3c   :  { %584 = vperm.xlu1 %907, %v530_v63  }
  0x3d   :  { %885 = vmatpush3.bf16.xpose.msra.mxu0 %v882_v54  ;;  %901 = vmatpush3.bf16.xpose.msra.mxu1 %v882_v54 }
  0x3f   :  { %589 = vperm.xlu0 %906, %v531_v0  }
  0x40   :  { %594 = vperm.xlu1 %907, %v532_v2  }
  0x43   :  { %599 = vperm.xlu0 %906, %v533_v9  }
  0x44   :  { %831 = vmatmul.mubr.f32.vlgmr.msra.gmra.mrb[0].mxu0 %v34_v5  ;;  %843 = vmatmul.mubr.f32.vlgmr.msra.gmra.mrb[0].mxu1 %v42_v6  ;;  %v653_v5 = vshrl.u32 %v652_v56, 7  ;;  %v649_v6 = vld [vmem:[%s1495_s5] sm:$0x1]  ;;  %s990_s5 = smov [#allocation2]  }
  0x45   :  { %833 = vmatprep.mubr.f32.mxu0 %v35_v7  ;;  %845 = vmatprep.mubr.f32.mxu1 %v43_v8  ;;  %s743_s11 = sshll.u32 %s990_s5, 4  ;;  %s744_s11 = int_to_ptr.vmem [resolvable:$true] %s743_s11 }
  0x46   :  { %604 = vperm.xlu1 %907, %v534_v10   ;;  %s940_s1 = scalar_lea.vmem %s744_s11, 16  ;;  %s944_s14 = scalar_lea.vmem %s744_s11, 32 }
  0x47   :  { %609 = vperm.xlu0 %906, %v535_v17   ;;  %p941_p0 = scmp.ne.s32.totalorder %s744_s11, %s940_s1  ;;  %p945_p1 = scmp.lt.s32.totalorder %s744_s11, %s744_s11 }
  0x48   :  { %834 = vmatmul.mubr.f32.gmra.mrb[2].mxu0 %v36_v13  ;;  %846 = vmatmul.mubr.f32.gmra.mrb[2].mxu1 %v44_v14  ;;  %p946_p2 = scmp.lt.s32.totalorder %s944_s14, %s940_s1 }
  0x49   :  { %836 = vmatprep.mubr.f32.mxu0 %v37_v15  ;;  %848 = vmatprep.mubr.f32.mxu1 %v45_v16  ;;  %v650_v15 = vadd.f32 0.5, %v649_v6  ;;  %v654_v16 = vsub.s32 0, %v653_v5 }
  0x4a   :  { %614 = vperm.xlu1 %907, %v536_v18   ;;  %p947_p3 = por %p946_p2, %p945_p1 }
  0x4c   :  { %837 = vmatmul.mubr.f32.gmra.mrb[4].mxu0 %v38_v19  ;;  %849 = vmatmul.mubr.f32.gmra.mrb[4].mxu1 %v46_v20  ;;  %p948_p4 = pnand %p947_p3, %p941_p0 }
  0x4d   :  { %839 = vmatprep.mubr.f32.mxu0 %v39_v21  ;;  %851 = vmatprep.mubr.f32.mxu1 %v47_v22 }
  0x50   :  { %840 = vmatmul.mubr.f32.gmra.mrb[6].mxu0 %v40_v23  ;;  %852 = vmatmul.mubr.f32.gmra.mrb[6].mxu1 %v48_v24 }
  0x86   :  { %v230_v26 = vpop.permute.xlu0 %229 }
  0x87   :  { %v240_v27 = vpop.permute.xlu1 %239  ;;  %v313_v41 = vadd.f32 %v1233_v34, %v230_v26 }
  0x88   :  { %v315_v4 = vadd.f32 %v1233_v34, %v240_v27 }
  0x8a   :  { %v235_v28 = vpop.permute.xlu0 %234 }
  0x8b   :  { %v245_v29 = vpop.permute.xlu1 %244  ;;  %v314_v37 = vadd.f32 %v1233_v34, %v235_v28 }
  0x8c   :  { %v316_v54 = vadd.f32 %v1233_v34, %v245_v29  ;;  %v1272_v29 = vrot.slane %v650_v15, %v654_v16 }
  0x8e   :  { %v250_v30 = vpop.permute.xlu0 %249 }
  0x8f   :  { %v1224_v31 = vpop.permute.xlu1 %254  ;;  %v317_v24 = vadd.f32 %v1233_v34, %v250_v30 }
  0x90   :  { %v318_v27 = vadd.f32 %v1233_v34, %v1224_v31 }
  0x96   :  { %v1226_v32 = vpop.permute.xlu0 %259 }
  0x97   :  { %v1228_v33 = vpop.permute.xlu1 %264 }
  0x9a   :  { %v270_v43 = vpop.permute.xlu0 %269 }
  0x9b   :  { %v275_v44 = vpop.permute.xlu1 %274  ;;  %v321_v19 = vadd.f32 %v1233_v34, %v270_v43 }
  0x9c   :  { %v322_v1 = vadd.f32 %v1233_v34, %v275_v44 }
  0x9e   :  { %v1245_v2 = vpop.permute.xlu0 %279 }
  0x9f   :  { %v285_v3 = vpop.permute.xlu1 %284 }
  0xa0   :  { %v1270_v28 = vadd.f32 %v1233_v34, %v285_v3 }
  0xa2   :  { %v1263_v20 = vpop.permute.xlu0 %289 }
  0xa3   :  { %v540_v21 = vpop.permute.xlu1 %539 }
  0xa7   :  { %v295_v31 = vpop.permute.xlu1 %294 }
  0xab   :  { %v300_v3 = vpop.permute.xlu1 %299 }
 0x117   :  { %v832_v35 = vpop.f32.mrb[0].mxu0  ;;  %v844_v36 = vpop.f32.mrb[0].mxu1 }
 0x118   :  { %v330_v38 = vmul.f32 2.0, %v832_v35  ;;  %v148_v39 = vpop.f32.mrb[1].mxu0  ;;  %v188_v40 = vpop.f32.mrb[1].mxu1  ;;  %v338_v57 = vmul.f32 2.0, %v844_v36 }
 0x119   :  { %v329_v42 = vmul.f32 2.0, %v148_v39  ;;  %v337_v14 = vmul.f32 2.0, %v188_v40 }
 0x11a   :  { %v346_v45 = vsub.f32 %v314_v37, %v330_v38  ;;  %v354_v7 = vsub.f32 %v322_v1, %v338_v57 }
 0x11b   :  { %v345_v46 = vsub.f32 %v313_v41, %v329_v42  ;;  %v835_v47 = vpop.f32.mrb[2].mxu0  ;;  %v847_v48 = vpop.f32.mrb[2].mxu1  ;;  %v353_v25 = vsub.f32 %v321_v19, %v337_v14 }
 0x11c   :  { %v362_v49 = vadd.f32 3.2e-11, %v346_v45  ;;  %v332_v50 = vmul.f32 2.0, %v835_v47  ;;  %v158_v52 = vpop.f32.mrb[3].mxu0  ;;  %v198_v53 = vpop.f32.mrb[3].mxu1  ;;  %v340_v38 = vmul.f32 2.0, %v847_v48 }
 0x11d   :  { %v361_v51 = vadd.f32 3.2e-11, %v345_v46  ;;  %v331_v62 = vmul.f32 2.0, %v158_v52  ;;  %v370_v22 = vadd.f32 3.2e-11, %v354_v7  ;;  %v545_v42 = vpop.permute.xlu0 %544 }
 0x11e   :  { %v378_v55 = vmax.f32 %v362_v49, 0.0  ;;  %v348_v61 = vsub.f32 %v316_v54, %v332_v50  ;;  %v369_v45 = vadd.f32 3.2e-11, %v353_v25  ;;  %v339_v49 = vmul.f32 2.0, %v198_v53 }
 0x11f   :  { %v1238_v58 = vmax.f32 %v361_v51, 0.0  ;;  %v838_v59 = vpop.f32.mrb[4].mxu0  ;;  %v1240_v60 = vpop.f32.mrb[4].mxu1  ;;  %v347_v11 = vsub.f32 %v315_v4, %v331_v62  ;;  %v1276_v37 = vmax.f32 %v370_v22, 0.0  ;;  %v1289_v53 = vadd.f32 %v1233_v34, %v1226_v32 }
 0x120   :  { %908 = vrsqrt.f32 %v378_v55  ;;  %v168_v63 = vpop.f32.mrb[5].mxu0  ;;  %v1242_v0 = vpop.f32.mrb[5].mxu1  ;;  %v364_v10 = vadd.f32 3.2e-11, %v348_v61  ;;  %v334_v23 = vmul.f32 2.0, %v838_v59  ;;  %vm402_vm0 = vcmp.eq.f32.partialorder %v378_v55, inf }
 0x121   :  { %910 = vrsqrt.f32 %v1238_v58  ;;  %v363_v18 = vadd.f32 3.2e-11, %v347_v11  ;;  %v405_v40 = vand.u32 2147483648, %v378_v55  ;;  %v333_v41 = vmul.f32 2.0, %v168_v63  ;;  %v550_v1 = vpop.permute.xlu0 %549 }
 0x122   :  { %v1260_v17 = vmax.f32 %v364_v10, 0.0  ;;  %v350_v30 = vsub.f32 %v318_v27, %v334_v23  ;;  %vm404_vm1 = vcmp.eq.f32.partialorder %v378_v55, 0.0  ;;  %vm395_vm2 = vcmp.eq.f32.partialorder %v1238_v58, inf }
 0x123   :  { %v1252_v8 = vpop.f32.mrb[6].mxu0  ;;  %v1254_v9 = vpop.f32.mrb[6].mxu1  ;;  %v1274_v35 = vmax.f32 %v363_v18, 0.0  ;;  %v398_v47 = vand.u32 2147483648, %v1238_v58  ;;  %vm397_vm3 = vcmp.eq.f32.partialorder %v1238_v58, 0.0  ;;  %v320_v63 = vadd.f32 %v1233_v34, %v1228_v33 }
 0x124   :  { %v1256_v12 = vpop.f32.mrb[7].mxu0  ;;  %v1258_v13 = vpop.f32.mrb[7].mxu1  ;;  %912 = vrsqrt.f32 %v1260_v17  ;;  %v366_v54 = vadd.f32 3.2e-11, %v350_v30  ;;  %v1295_v6 = vmax.f32 %v369_v45, 0.0  ;;  %v356_v7 = vsub.f32 %v1270_v28, %v340_v38 }
 0x125   :  { %914 = vrsqrt.f32 %v1274_v35  ;;  %vm416_vm4 = vcmp.eq.f32.partialorder %v1260_v17, inf  ;;  %v419_v15 = vand.u32 2147483648, %v1260_v17  ;;  %vm418_vm5 = vcmp.eq.f32.partialorder %v1260_v17, 0.0  ;;  %v555_v27 = vpop.permute.xlu0 %554 }
 0x126   :  { %916 = vrsqrt.f32 %v1276_v37  ;;  %v1300_v11 = vmax.f32 %v366_v54, 0.0  ;;  %v342_v19 = vmul.f32 2.0, %v1240_v60  ;;  %vm409_vm6 = vcmp.eq.f32.partialorder %v1274_v35, inf }
 0x127   :  { %v412_v25 = vand.u32 2147483648, %v1274_v35  ;;  %v372_v28 = vadd.f32 3.2e-11, %v356_v7  ;;  %vm411_vm7 = vcmp.eq.f32.partialorder %v1274_v35, 0.0  ;;  %v341_v30 = vmul.f32 2.0, %v1242_v0 }
 0x128   :  { %918 = vrsqrt.f32 %v1300_v11  ;;  %v327_v45 = vadd.f32 %v1233_v34, %v300_v3  ;;  %vm458_vm8 = vcmp.eq.f32.partialorder %v1276_v37, inf  ;;  %vm460_vm9 = vcmp.eq.f32.partialorder %v1276_v37, 0.0 }
 0x129   :  { %920 = vrsqrt.f32 %v1295_v6  ;;  %v560_v7 = vpop.permute.xlu0 %559  ;;  %vm430_vm10 = vcmp.eq.f32.partialorder %v1300_v11, inf  ;;  %vm451_vm11 = vcmp.eq.f32.partialorder %v1295_v6, inf  ;;  %vm432_vm12 = vcmp.eq.f32.partialorder %v1300_v11, 0.0 }
 0x12a   :  { %v909_v26 = vpop.eup %908  ;;  %vm453_vm15 = vcmp.eq.f32.partialorder %v1295_v6, 0.0 }
 0x12b   :  { %v401_v36 = vmul.f32 %v909_v26, %v378_v55  ;;  %v911_v39 = vpop.eup %910 }
 0x12c   :  { %v394_v44 = vmul.f32 %v911_v39, %v1238_v58 }
 0x12d   :  { %v403_v43 = vsel %vm402_vm0, %v378_v55, %v401_v36  ;;  %v349_v55 = vsub.f32 %v317_v24, %v333_v41  ;;  %v336_v24 = vmul.f32 2.0, %v1252_v8 }
 0x12e   :  { %v406_v46 = vsel %vm404_vm1, %v405_v40, %v403_v43  ;;  %v396_v51 = vsel %vm395_vm2, %v1238_v58, %v394_v44  ;;  %v913_v62 = vpop.eup %912  ;;  %v323_v58 = vadd.f32 %v1233_v34, %v1245_v2  ;;  %v325_v44 = vadd.f32 %v1233_v34, %v1263_v20 }
 0x12f   :  { %v618_v48 = vsub.f32 %v545_v42, %v406_v46  ;;  %v658_v50 = vsub.f32 %v1272_v29, %v406_v46  ;;  %v399_v52 = vsel %vm397_vm3, %v398_v47, %v396_v51  ;;  %v415_v10 = vmul.f32 %v913_v62, %v1260_v17  ;;  %v915_v16 = vpop.eup %914 }
 0x130   :  { %v617_v59 = vsub.f32 %v540_v21, %v399_v52  ;;  %v657_v61 = vsub.f32 %v1272_v29, %v399_v52  ;;  %v355_v32 = vsub.f32 %v323_v58, %v339_v49  ;;  %v365_v2 = vadd.f32 3.2e-11, %v349_v55  ;;  %v917_v38 = vpop.eup %916 }
 0x131   :  { %v634_v56 = vmax.f32 %v618_v48, 0.0  ;;  %v674_v57 = vmax.f32 %v658_v50, 0.0  ;;  %v417_v18 = vsel %vm416_vm4, %v1260_v17, %v415_v10  ;;  %v326_v21 = vadd.f32 %v1233_v34, %v295_v31  ;;  %v305_v17 = vpop.permute.xlu1 %304 }
 0x132   :  { %v633_v4 = vmax.f32 %v617_v59, 0.0  ;;  %v673_v5 = vmax.f32 %v657_v61, 0.0  ;;  %v420_v22 = vsel %vm418_vm5, %v419_v15, %v417_v18  ;;  %v408_v23 = vmul.f32 %v915_v16, %v1274_v35  ;;  %v919_v59 = vpop.eup %918 }
 0x133   :  { %v371_v26 = vadd.f32 3.2e-11, %v355_v32  ;;  %v1315_v60 = vmax.f32 %v365_v2, 0.0  ;;  %v620_v39 = vsub.f32 %v555_v27, %v420_v22  ;;  %v358_v8 = vsub.f32 %v326_v21, %v342_v19 }
 0x134   :  { %v690_v14 = vadd.f32 %v634_v56, %v633_v4  ;;  %v714_v33 = vadd.f32 %v674_v57, %v673_v5  ;;  %v410_v36 = vsel %vm409_vm6, %v1274_v35, %v408_v23  ;;  %v660_v41 = vsub.f32 %v1272_v29, %v420_v22  ;;  %v921_v4 = vpop.eup %920 }
 0x135   :  { %v413_v40 = vsel %vm411_vm7, %v412_v25, %v410_v36  ;;  %v352_v43 = vsub.f32 %v320_v63, %v336_v24  ;;  %v1323_v35 = vmax.f32 %v371_v26, 0.0  ;;  %922 = vrsqrt.f32 %v1315_v60  ;;  %v1330_v54 = vpop.permute.xlu1 %564 }
 0x136   :  { %v619_v42 = vsub.f32 %v550_v1, %v413_v40  ;;  %v659_v31 = vsub.f32 %v1272_v29, %v413_v40  ;;  %v328_v46 = vadd.f32 %v1233_v34, %v305_v17  ;;  %v1327_v47 = vmax.f32 %v372_v28, 0.0 }
 0x137   :  { %v457_v48 = vmul.f32 %v917_v38, %v1276_v37  ;;  %v636_v50 = vmax.f32 %v620_v39, 0.0  ;;  %v374_v51 = vadd.f32 3.2e-11, %v358_v8  ;;  %v357_v52 = vsub.f32 %v325_v44, %v341_v30 }
 0x138   :  { %v635_v0 = vmax.f32 %v619_v42, 0.0  ;;  %v675_v49 = vmax.f32 %v659_v31, 0.0  ;;  %v676_v20 = vmax.f32 %v660_v41, 0.0  ;;  %v368_v57 = vadd.f32 3.2e-11, %v352_v43 }
 0x139   :  { %924 = vrsqrt.f32 %v1323_v35  ;;  %v344_v34 = vmul.f32 2.0, %v1254_v9  ;;  %v335_v61 = vmul.f32 2.0, %v1256_v12  ;;  %v343_v62 = vmul.f32 2.0, %v1258_v13 }
 0x13a   :  { %v691_v55 = vadd.f32 %v690_v14, %v635_v0  ;;  %v715_v56 = vadd.f32 %v714_v33, %v675_v49  ;;  %v429_v63 = vmul.f32 %v919_v59, %v1300_v11  ;;  %v1341_v3 = vmax.f32 %v368_v57, 0.0  ;;  %v1353_v33 = vpop.permute.xlu1 %574 }
 0x13b   :  { %v373_v5 = vadd.f32 3.2e-11, %v357_v52  ;;  %v351_v9 = vsub.f32 %v1289_v53, %v335_v61  ;;  %v461_v12 = vand.u32 2147483648, %v1276_v37  ;;  %v359_v13 = vsub.f32 %v327_v45, %v343_v62 }
 0x13c   :  { %v1337_v58 = vadd.f32 %v691_v55, %v636_v50  ;;  %v1339_v1 = vadd.f32 %v715_v56, %v676_v20  ;;  %926 = vrsqrt.f32 %v1341_v3  ;;  %v431_v10 = vsel %vm430_vm10, %v1300_v11, %v429_v63 }
 0x13d   :  { %v1351_v32 = vmax.f32 %v374_v51, 0.0  ;;  %v367_v14 = vadd.f32 3.2e-11, %v351_v9  ;;  %v459_v15 = vsel %vm458_vm8, %v1276_v37, %v457_v48  ;;  %928 = vrsqrt.f32 %v1327_v47 }
 0x13e   :  { %v433_v53 = vand.u32 2147483648, %v1300_v11  ;;  %v360_v2 = vsub.f32 %v328_v46, %v344_v34  ;;  %v450_v18 = vmul.f32 %v921_v4, %v1295_v6  ;;  %v1360_v19 = vmax.f32 %v373_v5, 0.0  ;;  %v1371_v11 = vpop.permute.xlu0 %569  ;;  %v585_v40 = vpop.permute.xlu1 %584 }
 0x13f   :  { %v923_v16 = vpop.eup %922  ;;  %v1362_v21 = vmax.f32 %v367_v14, 0.0  ;;  %v454_v22 = vand.u32 2147483648, %v1295_v6  ;;  %v375_v25 = vadd.f32 3.2e-11, %v359_v13  ;;  %v462_v26 = vsel %vm460_vm9, %v461_v12, %v459_v15 }
 0x140   :  { %v434_v23 = vsel %vm432_vm12, %v433_v53, %v431_v10  ;;  %v422_v24 = vmul.f32 %v923_v16, %v1315_v60  ;;  %930 = vrsqrt.f32 %v1351_v32  ;;  %vm423_vm13 = vcmp.eq.f32.partialorder %v1315_v60, inf }
 0x141   :  { %v426_v27 = vand.u32 2147483648, %v1315_v60  ;;  %vm425_vm14 = vcmp.eq.f32.partialorder %v1315_v60, 0.0  ;;  %v376_v28 = vadd.f32 3.2e-11, %v360_v2  ;;  %932 = vrsqrt.f32 %v1362_v21 }
 0x142   :  { %v424_v17 = vsel %vm423_vm13, %v1315_v60, %v422_v24  ;;  %v452_v37 = vsel %vm451_vm11, %v1295_v6, %v450_v18  ;;  %v622_v38 = vsub.f32 %v1330_v54, %v434_v23  ;;  %934 = vrsqrt.f32 %v1360_v19  ;;  %v580_v52 = vpop.permute.xlu0 %579 }
 0x143   :  { %v925_v36 = vpop.eup %924  ;;  %v427_v39 = vsel %vm425_vm14, %v426_v27, %v424_v17  ;;  %v662_v8 = vsub.f32 %v1272_v29, %v434_v23  ;;  %v1383_v60 = vmax.f32 %v375_v25, 0.0  ;;  %v626_v42 = vsub.f32 %v585_v40, %v462_v26 }
 0x144   :  { %v621_v30 = vsub.f32 %v560_v7, %v427_v39  ;;  %v661_v41 = vsub.f32 %v1272_v29, %v427_v39  ;;  %v455_v43 = vsel %vm453_vm15, %v454_v22, %v452_v37  ;;  %v1386_v46 = vmax.f32 %v376_v28, 0.0 }
 0x145   :  { %v666_v0 = vsub.f32 %v1272_v29, %v462_v26  ;;  %v464_v49 = vmul.f32 %v925_v36, %v1323_v35  ;;  %v638_v48 = vmax.f32 %v622_v38, 0.0  ;;  %v678_v54 = vmax.f32 %v662_v8, 0.0  ;;  %v595_v38 = vpop.permute.xlu1 %594 }
 0x146   :  { %v927_v31 = vpop.eup %926  ;;  %v637_v44 = vmax.f32 %v621_v30, 0.0  ;;  %v677_v45 = vmax.f32 %v661_v41, 0.0  ;;  %936 = vrsqrt.f32 %v1383_v60  ;;  %v625_v55 = vsub.f32 %v580_v52, %v455_v43  ;;  %v590_v17 = vpop.permute.xlu0 %589 }
 0x147   :  { %v443_v50 = vmul.f32 %v927_v31, %v1341_v3  ;;  %v929_v51 = vpop.eup %928  ;;  %vm472_vm0 = vcmp.eq.f32.partialorder %v1327_v47, inf  ;;  %vm444_vm1 = vcmp.eq.f32.partialorder %v1341_v3, inf  ;;  %vm474_vm2 = vcmp.eq.f32.partialorder %v1327_v47, 0.0 }
 0x148   :  { %v693_v20 = vadd.f32 %v1337_v58, %v637_v44  ;;  %v717_v6 = vadd.f32 %v1339_v1, %v677_v45  ;;  %938 = vrsqrt.f32 %v1386_v46  ;;  %v471_v61 = vmul.f32 %v929_v51, %v1327_v47 }
 0x149   :  { %v445_v56 = vsel %vm444_vm1, %v1341_v3, %v443_v50  ;;  %v475_v62 = vand.u32 2147483648, %v1327_v47  ;;  %vm465_vm3 = vcmp.eq.f32.partialorder %v1323_v35, inf  ;;  %v447_v63 = vand.u32 2147483648, %v1341_v3 }
 0x14a   :  { %v694_v57 = vadd.f32 %v693_v20, %v638_v48  ;;  %v718_v59 = vadd.f32 %v717_v6, %v678_v54  ;;  %v931_v34 = vpop.eup %930  ;;  %v1403_v1 = vmax.f32 %v626_v42, 0.0  ;;  %v1405_v4 = vmax.f32 %v666_v0, 0.0  ;;  %v600_v50 = vpop.permute.xlu0 %599 }
 0x14b   :  { %v933_v58 = vpop.eup %932  ;;  %v466_v5 = vsel %vm465_vm3, %v1323_v35, %v464_v49  ;;  %vm446_vm4 = vcmp.eq.f32.partialorder %v1341_v3, 0.0  ;;  %v665_v7 = vsub.f32 %v1272_v29, %v455_v43  ;;  %v468_v12 = vand.u32 2147483648, %v1323_v35 }
 0x14c   :  { %v935_v9 = vpop.eup %934  ;;  %v448_v13 = vsel %vm446_vm4, %v447_v63, %v445_v56  ;;  %v436_v10 = vmul.f32 %v933_v58, %v1362_v21  ;;  %v641_v14 = vmax.f32 %v625_v55, 0.0  ;;  %vm467_vm5 = vcmp.eq.f32.partialorder %v1323_v35, 0.0  ;;  %v605_v55 = vpop.permute.xlu1 %604 }
 0x14d   :  { %vm437_vm6 = vcmp.eq.f32.partialorder %v1362_v21, inf  ;;  %v440_v15 = vand.u32 2147483648, %v1362_v21  ;;  %v473_v53 = vsel %vm472_vm0, %v1327_v47, %v471_v61  ;;  %v469_v3 = vsel %vm467_vm5, %v468_v12, %v466_v5 }
 0x14e   :  { %v438_v2 = vsel %vm437_vm6, %v1362_v21, %v436_v10  ;;  %vm439_vm7 = vcmp.eq.f32.partialorder %v1362_v21, 0.0  ;;  %v485_v16 = vmul.f32 %v931_v34, %v1351_v32  ;;  %v478_v18 = vmul.f32 %v935_v9, %v1360_v19  ;;  %v610_v10 = vpop.permute.xlu0 %609 }
 0x14f   :  { %v624_v22 = vsub.f32 %v1353_v33, %v448_v13  ;;  %v441_v35 = vsel %vm439_vm7, %v440_v15, %v438_v2  ;;  %v681_v23 = vmax.f32 %v665_v7, 0.0  ;;  %v664_v24 = vsub.f32 %v1272_v29, %v448_v13 }
 0x150   :  { %v623_v25 = vsub.f32 %v1371_v11, %v441_v35  ;;  %v663_v26 = vsub.f32 %v1272_v29, %v441_v35  ;;  %v937_v27 = vpop.eup %936  ;;  %v667_v28 = vsub.f32 %v1272_v29, %v469_v3  ;;  %vm486_vm8 = vcmp.eq.f32.partialorder %v1351_v32, inf }
 0x151   :  { %v489_v21 = vand.u32 2147483648, %v1351_v32  ;;  %vm479_vm9 = vcmp.eq.f32.partialorder %v1360_v19, inf  ;;  %vm481_vm10 = vcmp.eq.f32.partialorder %v1360_v19, 0.0  ;;  %v476_v37 = vsel %vm474_vm2, %v475_v62, %v473_v53 }
 0x152   :  { %v639_v33 = vmax.f32 %v623_v25, 0.0  ;;  %v679_v36 = vmax.f32 %v663_v26, 0.0  ;;  %v939_v11 = vpop.eup %938  ;;  %v480_v39 = vsel %vm479_vm9, %v1360_v19, %v478_v18  ;;  %v482_v40 = vand.u32 2147483648, %v1360_v19 }
 0x153   :  { %v640_v8 = vmax.f32 %v624_v22, 0.0  ;;  %v487_v30 = vsel %vm486_vm8, %v1351_v32, %v485_v16  ;;  %v680_v41 = vmax.f32 %v664_v24, 0.0  ;;  %v492_v43 = vmul.f32 %v937_v27, %v1383_v60  ;;  %v615_v16 = vpop.permute.xlu1 %614 }
 0x154   :  { %v695_v42 = vadd.f32 %v694_v57, %v639_v33  ;;  %v719_v31 = vadd.f32 %v718_v59, %v679_v36  ;;  %vm493_vm11 = vcmp.eq.f32.partialorder %v1383_v60, inf  ;;  %vm488_vm12 = vcmp.eq.f32.partialorder %v1351_v32, 0.0 }
 0x155   :  { %v627_v47 = vsub.f32 %v590_v17, %v469_v3  ;;  %v628_v44 = vsub.f32 %v595_v38, %v476_v37  ;;  %v499_v45 = vmul.f32 %v939_v11, %v1386_v46  ;;  %v483_v49 = vsel %vm481_vm10, %v482_v40, %v480_v39 }
 0x156   :  { %v720_v0 = vadd.f32 %v719_v31, %v680_v41  ;;  %v696_v48 = vadd.f32 %v695_v42, %v640_v8  ;;  %v496_v51 = vand.u32 2147483648, %v1383_v60  ;;  %v490_v52 = vsel %vm488_vm12, %v489_v21, %v487_v30 }
 0x157   :  { %vm495_vm13 = vcmp.eq.f32.partialorder %v1383_v60, 0.0  ;;  %vm500_vm14 = vcmp.eq.f32.partialorder %v1386_v46, inf  ;;  %v494_v54 = vsel %vm493_vm11, %v1383_v60, %v492_v43  ;;  %v668_v20 = vsub.f32 %v1272_v29, %v476_v37 }
 0x158   :  { %v697_v32 = vadd.f32 %v696_v48, %v641_v14  ;;  %v721_v6 = vadd.f32 %v720_v0, %v681_v23  ;;  %vm502_vm15 = vcmp.eq.f32.partialorder %v1386_v46, 0.0  ;;  %v629_v19 = vsub.f32 %v600_v50, %v483_v49 }
 0x159   :  { %v643_v56 = vmax.f32 %v627_v47, 0.0  ;;  %v669_v57 = vsub.f32 %v1272_v29, %v483_v49  ;;  %v501_v59 = vsel %vm500_vm14, %v1386_v46, %v499_v45  ;;  %v683_v61 = vmax.f32 %v667_v28, 0.0  ;;  %v689_v47 = vld [vmem:[#allocation2] sm:$0x1] }
 0x15a   :  { %v698_v34 = vadd.f32 %v697_v32, %v1403_v1  ;;  %v722_v62 = vadd.f32 %v721_v6, %v1405_v4  ;;  %v497_v63 = vsel %vm495_vm13, %v496_v51, %v494_v54  ;;  %v503_v60 = vand.u32 2147483648, %v1386_v46 }
 0x15b   :  { %v630_v58 = vsub.f32 %v605_v55, %v490_v52  ;;  %v670_v5 = vsub.f32 %v1272_v29, %v490_v52  ;;  %v644_v9 = vmax.f32 %v628_v44, 0.0  ;;  %v684_v12 = vmax.f32 %v668_v20, 0.0  ;;  %v713_v44 = vld [vmem:[#allocation4] sm:$0x1] }
 0x15c   :  { %v699_v7 = vadd.f32 %v698_v34, %v643_v56  ;;  %v723_v13 = vadd.f32 %v722_v62, %v683_v61  ;;  %v504_v14 = vsel %vm502_vm15, %v503_v60, %v501_v59  ;;  %v645_v15 = vmax.f32 %v629_v19, 0.0 }
 0x15d   :  { %v685_v53 = vmax.f32 %v669_v57, 0.0  ;;  %v631_v1 = vsub.f32 %v610_v10, %v497_v63  ;;  %v671_v4 = vsub.f32 %v1272_v29, %v497_v63  ;;  %v646_v18 = vmax.f32 %v630_v58, 0.0 }
 0x15e   :  { %v700_v3 = vadd.f32 %v699_v7, %v644_v9  ;;  %v724_v2 = vadd.f32 %v723_v13, %v684_v12  ;;  %v686_v22 = vmax.f32 %v670_v5, 0.0  ;;  %v632_v35 = vsub.f32 %v615_v16, %v504_v14 }
 0x15f   :  { %v672_v24 = vsub.f32 %v1272_v29, %v504_v14  ;;  %v647_v26 = vmax.f32 %v631_v1, 0.0  ;;  %v687_v17 = vmax.f32 %v671_v4, 0.0 }
 0x160   :  { %v701_v23 = vadd.f32 %v700_v3, %v645_v15  ;;  %v725_v25 = vadd.f32 %v724_v2, %v685_v53  ;;  %v648_v28 = vmax.f32 %v632_v35, 0.0 }
 0x161   :  { %v688_v33 = vmax.f32 %v672_v24, 0.0 }
 0x162   :  { %v702_v27 = vadd.f32 %v701_v23, %v646_v18  ;;  %v726_v46 = vadd.f32 %v725_v25, %v686_v22 }
 0x164   :  { %v703_v21 = vadd.f32 %v702_v27, %v647_v26  ;;  %v727_v36 = vadd.f32 %v726_v46, %v687_v17 }
 0x166   :  { %v704_v37 = vadd.f32 %v703_v21, %v648_v28  ;;  %v728_v11 = vadd.f32 %v727_v36, %v688_v33 }
 0x168   :  { %v705_v38 = vrot.slane %v704_v37, 4  ;;  %v729_v39 = vrot.slane %v728_v11, 4 }
 0x16a   :  { %v706_v40 = vadd.f32 %v705_v38, %v704_v37  ;;  %v730_v8 = vadd.f32 %v729_v39, %v728_v11 }
 0x16c   :  { %v707_v30 = vrot.slane %v706_v40, 2  ;;  %v731_v41 = vrot.slane %v730_v8, 2 }
 0x16e   :  { %v708_v42 = vadd.f32 %v707_v30, %v706_v40  ;;  %v732_v31 = vadd.f32 %v731_v41, %v730_v8 }
 0x170   :  { %v709_v29 = vrot.slane %v708_v42, 1  ;;  %v733_v43 = vrot.slane %v732_v31, 1 }
 0x172   :  { %v710_v45 = vadd.f32 %v709_v29, %v708_v42  ;;  %v734_v0 = vadd.f32 %v733_v43, %v732_v31 }
 0x174   :  { %v711_v49 = vadd.f32 %v710_v45, %v689_v47  ;;  %v735_v48 = vadd.f32 %v734_v0, %v713_v44 }
 0x176   :  { %712 = vst [vmem:[#allocation2] sm:$0x1] %v711_v49  ;;  %736 = vst [vmem:[#allocation4] sm:$0x1] %v735_v48 }
 0x177   :  { %951 = shalt.err (!%p948_p4)
}
 0x178   :  { %s952_s16 = scalar_lea.hbm %s1496_s6, 16 }
 0x179   :  { %p953_p5 = scmp.ne.s32.totalorder %s1496_s6, %s952_s16  ;;  %p956_p6 = scmp.lt.u32.totalorder %s952_s16, %s1496_s6 }
 0x17b   :  { %p958_p7 = pnand %p956_p6, %p953_p5 }
 0x17d   :  { %961 = shalt.err (!%p958_p7)
}
 0x17e   :  { %746 = dma.vmem_to_hbm [thread:$0]  %s744_s11, 16, %s1496_s6, [#allocation3]  }
 0x17f   :  { %s962_s22 = scalar_lea.vmem %s1458_s13, 16  ;;  %s966_s23 = scalar_lea.vmem %s1458_s13, 32 }
 0x180   :  { %p963_p8 = scmp.ne.s32.totalorder %s1458_s13, %s962_s22  ;;  %p967_p9 = scmp.lt.s32.totalorder %s1458_s13, %s1458_s13 }
 0x181   :  { %p968_p10 = scmp.lt.s32.totalorder %s966_s23, %s962_s22 }
 0x183   :  { %p969_p11 = por %p968_p10, %p967_p9 }
 0x185   :  { %p970_p12 = pnand %p969_p11, %p963_p8 }
 0x187   :  { %973 = shalt.err (!%p970_p12)
}
 0x188   :  { %s974_s26 = scalar_lea.hbm %s1497_s7, 16 }
 0x189   :  { %p975_p13 = scmp.ne.s32.totalorder %s1497_s7, %s974_s26  ;;  %p978_p0 = scmp.lt.u32.totalorder %s974_s26, %s1497_s7 }
 0x18b   :  { %p980_p1 = pnand %p978_p0, %p975_p13 }
 0x18d   :  { %983 = shalt.err (!%p980_p1)
}
 0x18e   :  { %756 = dma.vmem_to_hbm [thread:$0]  %s1458_s13, 16, %s1497_s7, [#allocation5]  }
 0x18f   :  { %984 = dma.done.wait [#allocation3], 16  }
 0x190   :  { %985 = vsyncadd [#allocation3], 4294967280 }
 0x191   :  { %986 = dma.done.wait [#allocation5], 16  }
 0x192   :  { %987 = vsyncadd [#allocation5], 4294967280 }
 0x193   :  { %763 = vsyncpa [#allocation3], 1 }
 0x194   :  { %764 = vsyncpa [#allocation5], 1 }

</bundles_post_ra>
